<compile_context>
chip_gen: v7x
topology: tpu7x:2x2x1
jax: 0.10.0
libtpu: 0.0.40
codegen_flags: <defaults>
</compile_context>

<pallas_src>
import functools
import math

import jax
import jax.numpy as jnp
from jax.experimental import pallas as pl
from jax.experimental.pallas import tpu as pltpu

LN_EPS = 1e-5   # PyTorch nn.LayerNorm default
LANE = 128


def _round_up(x, m):
    return ((x + m - 1) // m) * m


def _cdiv(a, b):
    return -(-a // b)


def _layernorm(h, gamma, beta, true_dim):
    # One-pass statistics: both cross-lane reductions are independent (issue
    # back-to-back on the XLU).  Padded lanes of h are exactly zero, so sums
    # over the padded axis equal sums over the true feature dim; divide by the
    # true dim.  Clamp the variance at 0 to guard against cancellation when
    # |mean| >> std.
    inv_d = 1.0 / float(true_dim)
    mu = jnp.sum(h, axis=-1, keepdims=True) * inv_d
    ms = jnp.sum(h * h, axis=-1, keepdims=True) * inv_d
    var = jnp.maximum(ms - mu * mu, 0.0)
    return (h - mu) * jax.lax.rsqrt(var + LN_EPS) * gamma + beta


def actor_kernel(
    x_ref,
    w1_ref, p1_ref,      # p1 rows: [b1; ln1_gamma; ln1_beta]   (3, fc1_p)
    w2_ref, p2_ref,      # p2 rows: [b2; ln2_gamma; ln2_beta]   (3, fc2_p)
    w3_ref, b3_ref,
    o_ref,
    *, fc1_dims, fc2_dims,
):
    x = x_ref[...]

    # fc1 -> LayerNorm -> ReLU   (all dims lane-dense; LN divides by true dim)
    h1 = jnp.dot(x, w1_ref[...], preferred_element_type=jnp.float32) + p1_ref[0:1, :]
    h1 = jnp.maximum(_layernorm(h1, p1_ref[1:2, :], p1_ref[2:3, :], fc1_dims), 0.0)

    # fc2 -> LayerNorm -> ReLU
    h2 = jnp.dot(h1, w2_ref[...], preferred_element_type=jnp.float32) + p2_ref[0:1, :]
    h2 = jnp.maximum(_layernorm(h2, p2_ref[1:2, :], p2_ref[2:3, :], fc2_dims), 0.0)

    # mu -> tanh  (padded action lanes have zero weight/bias -> tanh(0)=0)
    out = jnp.dot(h2, w3_ref[...], preferred_element_type=jnp.float32) + b3_ref[...]
    o_ref[...] = jnp.tanh(out).astype(o_ref.dtype)


def prepare_params(params):
    """One-time padding/packing of parameters (hoisted out of the hot path).

    Returns (weights, meta):
      weights = (w1 [in, fc1_p], p1 [3, fc1_p], w2 [fc1_p, fc2_p],
                 p2 [3, fc2_p], w3 [fc2_p, na_p], b3 [1, na_p])
    Padded columns (gamma/beta/weights/bias) are zero so padded lanes stay 0.
    """
    input_dims = params["w1"].shape[0]
    fc1_dims = params["w1"].shape[1]
    fc2_dims = params["w2"].shape[1]
    n_actions = params["w_mu"].shape[1]
    fc1_p = _round_up(fc1_dims, LANE)
    fc2_p = _round_up(fc2_dims, LANE)
    na_p = _round_up(n_actions, LANE)

    def pad_cols(a, cols):
        return jnp.pad(a, ((0, 0), (0, cols - a.shape[1])))

    def pad_rows(a, rows):
        return jnp.pad(a, ((0, rows - a.shape[0]), (0, 0)))

    w1 = pad_cols(params["w1"], fc1_p)
    p1 = jnp.concatenate(
        [pad_cols(params["b1"], fc1_p),
         pad_cols(params["ln1_g"], fc1_p),
         pad_cols(params["ln1_b"], fc1_p)], axis=0)
    w2 = pad_cols(pad_rows(params["w2"], fc1_p), fc2_p)
    p2 = jnp.concatenate(
        [pad_cols(params["b2"], fc2_p),
         pad_cols(params["ln2_g"], fc2_p),
         pad_cols(params["ln2_b"], fc2_p)], axis=0)
    w3 = pad_cols(pad_rows(params["w_mu"], fc2_p), na_p)
    b3 = pad_cols(params["b_mu"], na_p)

    meta = dict(input_dims=input_dims, fc1_dims=fc1_dims, fc2_dims=fc2_dims,
                n_actions=n_actions, fc1_p=fc1_p, fc2_p=fc2_p, na_p=na_p)
    return (w1, p1, w2, p2, w3, b3), meta


def _choose_tiling(B, batch_tile):
    """Pick (tile_rows, padded_batch, num_programs).

    * tile rows always a multiple of 8 (sublane constraint).
    * even number of programs whenever the batch has >= 16 rows, so v7x's two
      TensorCores both get real work (harmless on v5e/v6e).
    * minimal zero-row padding (tile = cdiv(B, n) rounded to 8, not batch_tile).
    """
    B8 = _round_up(max(B, 1), 8)
    bt = _round_up(max(batch_tile, 8), 8)
    n = _cdiv(B8, bt)
    if n == 1:
        if B8 >= 16:          # split into two programs with real rows each
            n = 2
    elif n % 2 == 1:
        n += 1                # keep program count even for megacore balance
    tb = _round_up(_cdiv(B8, n), 8)
    return tb, n * tb, n


def actor_forward(state, weights, meta, *, batch_tile=512):
    """state: [B, input_dims] f32. weights/meta: from prepare_params()."""
    w1, p1, w2, p2, w3, b3 = weights
    B, input_dims = state.shape
    assert input_dims == meta["input_dims"]
    fc1_p, fc2_p, na_p = meta["fc1_p"], meta["fc2_p"], meta["na_p"]

    TB, B_pad, n_prog = _choose_tiling(B, batch_tile)
    x = state if B_pad == B else jnp.pad(state, ((0, B_pad - B), (0, 0)))

    # activations follow the batch grid; parameters are VMEM-resident
    x_spec = pl.BlockSpec((TB, input_dims), lambda i: (i, 0))
    o_spec = pl.BlockSpec((TB, na_p), lambda i: (i, 0))

    def param_specs(single_buffer):
        if single_buffer:
            # Constant index map -> the second pipeline buffer is dead weight.
            return [pl.BlockSpec(w.shape, lambda i: (0, 0),
                                 pipeline_mode=pl.Buffered(1))
                    for w in weights]
        return [pl.BlockSpec(w.shape, lambda i: (0, 0)) for w in weights]

    # VMEM budget: resident params (single-buffered) + double-buffered
    # activation tiles + in-kernel temporaries + a few MiB headroom.
    param_bytes = 4 * sum(int(w.size) for w in weights)
    act_bytes = 2 * 4 * TB * (input_dims + na_p)        # x/out tiles, 2 buffers
    tmp_bytes = 4 * TB * 3 * (fc1_p + fc2_p)            # h1/h2 + matmul temps
    vmem_limit = int(min(32 << 20, param_bytes + act_bytes + tmp_bytes + (4 << 20)))

    kernel = functools.partial(actor_kernel,
                               fc1_dims=meta["fc1_dims"],
                               fc2_dims=meta["fc2_dims"])

    def run(specs):
        return pl.pallas_call(
            kernel,
            out_shape=jax.ShapeDtypeStruct((B_pad, na_p), jnp.float32),
            grid=(n_prog,),
            in_specs=[x_spec] + specs,
            out_specs=o_spec,
            compiler_params=pltpu.CompilerParams(
                dimension_semantics=("parallel",),
                vmem_limit_bytes=vmem_limit,
            ),
        )(x, *weights)

    try:
        out_padded = run(param_specs(single_buffer=True))
    except Exception:
        # Fallback if this JAX build rejects pipeline_mode=Buffered(1):
        # default double buffering of the (tiny) params is still correct.
        out_padded = run(param_specs(single_buffer=False))

    return out_padded[:B, :meta["n_actions"]]


def init_params(key, input_dims, fc1_dims, fc2_dims, n_actions):
    """Deterministic init mirroring the PyTorch module's __init__.

    PyTorch nn.Linear weight has shape (out, in); forward is x @ W.T + b.
    We store the transposed weight [in, out] so the kernel does x @ W.
    f1 = 1/sqrt(fc1.weight.size(0)) = 1/sqrt(fc1_dims)  (as written in the module)
    f2 = 1/sqrt(fc2.weight.size(0)) = 1/sqrt(fc2_dims)
    f3 = 0.003
    LayerNorm: gamma=1, beta=0.
    """
    ks = jax.random.split(key, 6)
    f1 = 1.0 / math.sqrt(fc1_dims)
    f2 = 1.0 / math.sqrt(fc2_dims)
    f3 = 0.003
    u = lambda k, shp, f: jax.random.uniform(k, shp, jnp.float32, minval=-f, maxval=f)
    return {
        "w1": u(ks[0], (input_dims, fc1_dims), f1),
        "b1": u(ks[1], (1, fc1_dims), f1),
        "ln1_g": jnp.ones((1, fc1_dims), jnp.float32),
        "ln1_b": jnp.zeros((1, fc1_dims), jnp.float32),
        "w2": u(ks[2], (fc1_dims, fc2_dims), f2),
        "b2": u(ks[3], (1, fc2_dims), f2),
        "ln2_g": jnp.ones((1, fc2_dims), jnp.float32),
        "ln2_b": jnp.zeros((1, fc2_dims), jnp.float32),
        "w_mu": u(ks[4], (fc2_dims, n_actions), f3),
        "b_mu": u(ks[5], (1, n_actions), f3),
    }


def actor_forward_ref(state, p):
    """Pure-JAX reference (two-pass LayerNorm, unpadded) for correctness check."""
    def ln(h, g, b):
        m = jnp.mean(h, -1, keepdims=True)
        v = jnp.mean((h - m) ** 2, -1, keepdims=True)
        return (h - m) / jnp.sqrt(v + LN_EPS) * g + b
    h = jnp.maximum(ln(state @ p["w1"] + p["b1"], p["ln1_g"], p["ln1_b"]), 0.0)
    h = jnp.maximum(ln(h @ p["w2"] + p["b2"], p["ln2_g"], p["ln2_b"]), 0.0)
    return jnp.tanh(h @ p["w_mu"] + p["b_mu"])


if __name__ == "__main__":
    # Pendulum-v1: observation dim = 3, action dim = 1. Small hidden dims.
    INPUT_DIMS, FC1, FC2, N_ACTIONS = 3, 64, 32, 1

    key = jax.random.PRNGKey(0)
    k_param, k_state = jax.random.split(key)
    params = init_params(k_param, INPUT_DIMS, FC1, FC2, N_ACTIONS)
    weights, meta = prepare_params(params)   # one-time pad/pack, outside hot path

    # Two batch sizes: single-program path (B=8) and the 2-program
    # megacore path (B=48 -> grid=(2,), 24-row tiles).
    for B in (8, 48):
        state = jax.random.normal(jax.random.fold_in(k_state, B),
                                  (B, INPUT_DIMS), jnp.float32)
        out = actor_forward(state, weights, meta)
        out = jax.block_until_ready(out)

        ref = actor_forward_ref(state, params)
        assert out.shape == (B, N_ACTIONS)
        assert jnp.allclose(out, ref, atol=1e-4, rtol=1e-4), (
            f"B={B}: mismatch vs reference, "
            f"max abs err={float(jnp.max(jnp.abs(out - ref)))}"
        )

    print("KERNEL_OK")
</pallas_src>

<mosaic_0001>
module attributes {stable_mosaic.version = 11 : i64} {
  func.func @actor_kernel(%arg0: i32, %arg1: memref<8x3xf32, #tpu.memory_space<vmem>>, %arg2: memref<3x128xf32, #tpu.memory_space<vmem>>, %arg3: memref<3x128xf32, #tpu.memory_space<vmem>>, %arg4: memref<128x128xf32, #tpu.memory_space<vmem>>, %arg5: memref<3x128xf32, #tpu.memory_space<vmem>>, %arg6: memref<128x128xf32, #tpu.memory_space<vmem>>, %arg7: memref<1x128xf32, #tpu.memory_space<vmem>>, %arg8: memref<8x128xf32, #tpu.memory_space<vmem>>) attributes {dimension_semantics = [#tpu.dimension_semantics<parallel>], iteration_bounds = array<i64: 1>, scalar_prefetch = 0 : i64, scratch_operands = 0 : i64, tpu.core_type = #tpu.core_type<tc>, window_params = [{transform_indices = @transform_0, window_bounds = array<i64: 8, 3>}, {pipeline_mode = #tpu.pipeline_mode<synchronous>, transform_indices = @transform_1, window_bounds = array<i64: 3, 128>}, {pipeline_mode = #tpu.pipeline_mode<synchronous>, transform_indices = @transform_2, window_bounds = array<i64: 3, 128>}, {pipeline_mode = #tpu.pipeline_mode<synchronous>, transform_indices = @transform_3, window_bounds = array<i64: 128, 128>}, {pipeline_mode = #tpu.pipeline_mode<synchronous>, transform_indices = @transform_4, window_bounds = array<i64: 3, 128>}, {pipeline_mode = #tpu.pipeline_mode<synchronous>, transform_indices = @transform_5, window_bounds = array<i64: 128, 128>}, {pipeline_mode = #tpu.pipeline_mode<synchronous>, transform_indices = @transform_6, window_bounds = array<i64: 1, 128>}, {transform_indices = @transform_7, window_bounds = array<i64: 8, 128>}]} {
    %c0 = arith.constant 0 : index
    %c0_0 = arith.constant 0 : index
    %0 = vector.load %arg1[%c0, %c0_0] : memref<8x3xf32, #tpu.memory_space<vmem>>, vector<8x3xf32>
    %c0_1 = arith.constant 0 : index
    %c0_2 = arith.constant 0 : index
    %1 = vector.load %arg2[%c0_1, %c0_2] : memref<3x128xf32, #tpu.memory_space<vmem>>, vector<3x128xf32>
    %cst = arith.constant dense<0.000000e+00> : vector<8x128xf32>
    %2 = tpu.matmul %0, %1, %cst {dimension_numbers = #tpu.dot_dimension_numbers<[1], [0], [0], [1], [0, 0, 1, 1], [], []>} : vector<8x3xf32>, vector<3x128xf32>, vector<8x128xf32> -> vector<8x128xf32>
    %c0_3 = arith.constant 0 : index
    %c0_4 = arith.constant 0 : index
    %3 = vector.load %arg3[%c0_3, %c0_4] : memref<3x128xf32, #tpu.memory_space<vmem>>, vector<1x128xf32>
    %4 = vector.broadcast %3 : vector<1x128xf32> to vector<8x128xf32>
    %5 = arith.addf %2, %4 : vector<8x128xf32>
    %c1 = arith.constant 1 : index
    %c0_5 = arith.constant 0 : index
    %6 = vector.load %arg3[%c1, %c0_5] : memref<3x128xf32, #tpu.memory_space<vmem>>, vector<1x128xf32>
    %c2 = arith.constant 2 : index
    %c0_6 = arith.constant 0 : index
    %7 = vector.load %arg3[%c2, %c0_6] : memref<3x128xf32, #tpu.memory_space<vmem>>, vector<1x128xf32>
    %cst_7 = arith.constant dense<0.000000e+00> : vector<8xf32>
    %8 = vector.multi_reduction <add>, %5, %cst_7 [1] : vector<8x128xf32> to vector<8xf32>
    %9 = vector.shape_cast %8 : vector<8xf32> to vector<8x1xf32>
    %cst_8 = arith.constant 1.562500e-02 : f32
    %10 = vector.broadcast %cst_8 : f32 to vector<8x1xf32>
    %11 = arith.mulf %9, %10 : vector<8x1xf32>
    %12 = arith.mulf %5, %5 : vector<8x128xf32>
    %cst_9 = arith.constant dense<0.000000e+00> : vector<8xf32>
    %13 = vector.multi_reduction <add>, %12, %cst_9 [1] : vector<8x128xf32> to vector<8xf32>
    %14 = vector.shape_cast %13 : vector<8xf32> to vector<8x1xf32>
    %cst_10 = arith.constant 1.562500e-02 : f32
    %15 = vector.broadcast %cst_10 : f32 to vector<8x1xf32>
    %16 = arith.mulf %14, %15 : vector<8x1xf32>
    %17 = arith.mulf %11, %11 : vector<8x1xf32>
    %18 = arith.subf %16, %17 : vector<8x1xf32>
    %cst_11 = arith.constant 0.000000e+00 : f32
    %19 = vector.broadcast %cst_11 : f32 to vector<8x1xf32>
    %20 = arith.maximumf %18, %19 : vector<8x1xf32>
    %21 = vector.broadcast %11 : vector<8x1xf32> to vector<8x128xf32>
    %22 = arith.subf %5, %21 : vector<8x128xf32>
    %cst_12 = arith.constant 9.99999974E-6 : f32
    %23 = vector.broadcast %cst_12 : f32 to vector<8x1xf32>
    %24 = arith.addf %20, %23 : vector<8x1xf32>
    %25 = math.rsqrt %24 : vector<8x1xf32>
    %26 = vector.broadcast %25 : vector<8x1xf32> to vector<8x128xf32>
    %27 = arith.mulf %22, %26 : vector<8x128xf32>
    %28 = vector.broadcast %6 : vector<1x128xf32> to vector<8x128xf32>
    %29 = arith.mulf %27, %28 : vector<8x128xf32>
    %30 = vector.broadcast %7 : vector<1x128xf32> to vector<8x128xf32>
    %31 = arith.addf %29, %30 : vector<8x128xf32>
    %cst_13 = arith.constant 0.000000e+00 : f32
    %32 = vector.broadcast %cst_13 : f32 to vector<8x128xf32>
    %33 = arith.maximumf %31, %32 : vector<8x128xf32>
    %c0_14 = arith.constant 0 : index
    %c0_15 = arith.constant 0 : index
    %34 = vector.load %arg4[%c0_14, %c0_15] : memref<128x128xf32, #tpu.memory_space<vmem>>, vector<128x128xf32>
    %cst_16 = arith.constant dense<0.000000e+00> : vector<8x128xf32>
    %35 = tpu.matmul %33, %34, %cst_16 {dimension_numbers = #tpu.dot_dimension_numbers<[1], [0], [0], [1], [0, 0, 1, 1], [], []>} : vector<8x128xf32>, vector<128x128xf32>, vector<8x128xf32> -> vector<8x128xf32>
    %c0_17 = arith.constant 0 : index
    %c0_18 = arith.constant 0 : index
    %36 = vector.load %arg5[%c0_17, %c0_18] : memref<3x128xf32, #tpu.memory_space<vmem>>, vector<1x128xf32>
    %37 = vector.broadcast %36 : vector<1x128xf32> to vector<8x128xf32>
    %38 = arith.addf %35, %37 : vector<8x128xf32>
    %c1_19 = arith.constant 1 : index
    %c0_20 = arith.constant 0 : index
    %39 = vector.load %arg5[%c1_19, %c0_20] : memref<3x128xf32, #tpu.memory_space<vmem>>, vector<1x128xf32>
    %c2_21 = arith.constant 2 : index
    %c0_22 = arith.constant 0 : index
    %40 = vector.load %arg5[%c2_21, %c0_22] : memref<3x128xf32, #tpu.memory_space<vmem>>, vector<1x128xf32>
    %cst_23 = arith.constant dense<0.000000e+00> : vector<8xf32>
    %41 = vector.multi_reduction <add>, %38, %cst_23 [1] : vector<8x128xf32> to vector<8xf32>
    %42 = vector.shape_cast %41 : vector<8xf32> to vector<8x1xf32>
    %cst_24 = arith.constant 3.125000e-02 : f32
    %43 = vector.broadcast %cst_24 : f32 to vector<8x1xf32>
    %44 = arith.mulf %42, %43 : vector<8x1xf32>
    %45 = arith.mulf %38, %38 : vector<8x128xf32>
    %cst_25 = arith.constant dense<0.000000e+00> : vector<8xf32>
    %46 = vector.multi_reduction <add>, %45, %cst_25 [1] : vector<8x128xf32> to vector<8xf32>
    %47 = vector.shape_cast %46 : vector<8xf32> to vector<8x1xf32>
    %cst_26 = arith.constant 3.125000e-02 : f32
    %48 = vector.broadcast %cst_26 : f32 to vector<8x1xf32>
    %49 = arith.mulf %47, %48 : vector<8x1xf32>
    %50 = arith.mulf %44, %44 : vector<8x1xf32>
    %51 = arith.subf %49, %50 : vector<8x1xf32>
    %cst_27 = arith.constant 0.000000e+00 : f32
    %52 = vector.broadcast %cst_27 : f32 to vector<8x1xf32>
    %53 = arith.maximumf %51, %52 : vector<8x1xf32>
    %54 = vector.broadcast %44 : vector<8x1xf32> to vector<8x128xf32>
    %55 = arith.subf %38, %54 : vector<8x128xf32>
    %cst_28 = arith.constant 9.99999974E-6 : f32
    %56 = vector.broadcast %cst_28 : f32 to vector<8x1xf32>
    %57 = arith.addf %53, %56 : vector<8x1xf32>
    %58 = math.rsqrt %57 : vector<8x1xf32>
    %59 = vector.broadcast %58 : vector<8x1xf32> to vector<8x128xf32>
    %60 = arith.mulf %55, %59 : vector<8x128xf32>
    %61 = vector.broadcast %39 : vector<1x128xf32> to vector<8x128xf32>
    %62 = arith.mulf %60, %61 : vector<8x128xf32>
    %63 = vector.broadcast %40 : vector<1x128xf32> to vector<8x128xf32>
    %64 = arith.addf %62, %63 : vector<8x128xf32>
    %cst_29 = arith.constant 0.000000e+00 : f32
    %65 = vector.broadcast %cst_29 : f32 to vector<8x128xf32>
    %66 = arith.maximumf %64, %65 : vector<8x128xf32>
    %c0_30 = arith.constant 0 : index
    %c0_31 = arith.constant 0 : index
    %67 = vector.load %arg6[%c0_30, %c0_31] : memref<128x128xf32, #tpu.memory_space<vmem>>, vector<128x128xf32>
    %cst_32 = arith.constant dense<0.000000e+00> : vector<8x128xf32>
    %68 = tpu.matmul %66, %67, %cst_32 {dimension_numbers = #tpu.dot_dimension_numbers<[1], [0], [0], [1], [0, 0, 1, 1], [], []>} : vector<8x128xf32>, vector<128x128xf32>, vector<8x128xf32> -> vector<8x128xf32>
    %c0_33 = arith.constant 0 : index
    %c0_34 = arith.constant 0 : index
    %69 = vector.load %arg7[%c0_33, %c0_34] : memref<1x128xf32, #tpu.memory_space<vmem>>, vector<1x128xf32>
    %70 = vector.broadcast %69 : vector<1x128xf32> to vector<8x128xf32>
    %71 = arith.addf %68, %70 : vector<8x128xf32>
    %72 = math.tanh %71 : vector<8x128xf32>
    %c0_35 = arith.constant 0 : index
    %c0_36 = arith.constant 0 : index
    %73 = vector.load %arg8[%c0_35, %c0_36] : memref<8x128xf32, #tpu.memory_space<vmem>>, vector<8x128xf32>
    tpu.vector_store %arg8[%c0_35, %c0_36], %72 {strides = array<i32>} : memref<8x128xf32, #tpu.memory_space<vmem>>, vector<8x128xf32>,
    return
  }
  func.func @transform_0(%arg0: i32) -> (i32, i32) {
    %c0_i32 = arith.constant 0 : i32
    %c0_i32_0 = arith.constant 0 : i32
    return %arg0, %c0_i32 : i32, i32
  }
  func.func @transform_1(%arg0: i32) -> (i32, i32) {
    %c0_i32 = arith.constant 0 : i32
    %c0_i32_0 = arith.constant 0 : i32
    %c0_i32_1 = arith.constant 0 : i32
    return %c0_i32, %c0_i32_0 : i32, i32
  }
  func.func @transform_2(%arg0: i32) -> (i32, i32) {
    %c0_i32 = arith.constant 0 : i32
    %c0_i32_0 = arith.constant 0 : i32
    %c0_i32_1 = arith.constant 0 : i32
    return %c0_i32, %c0_i32_0 : i32, i32
  }
  func.func @transform_3(%arg0: i32) -> (i32, i32) {
    %c0_i32 = arith.constant 0 : i32
    %c0_i32_0 = arith.constant 0 : i32
    %c0_i32_1 = arith.constant 0 : i32
    return %c0_i32, %c0_i32_0 : i32, i32
  }
  func.func @transform_4(%arg0: i32) -> (i32, i32) {
    %c0_i32 = arith.constant 0 : i32
    %c0_i32_0 = arith.constant 0 : i32
    %c0_i32_1 = arith.constant 0 : i32
    return %c0_i32, %c0_i32_0 : i32, i32
  }
  func.func @transform_5(%arg0: i32) -> (i32, i32) {
    %c0_i32 = arith.constant 0 : i32
    %c0_i32_0 = arith.constant 0 : i32
    %c0_i32_1 = arith.constant 0 : i32
    return %c0_i32, %c0_i32_0 : i32, i32
  }
  func.func @transform_6(%arg0: i32) -> (i32, i32) {
    %c0_i32 = arith.constant 0 : i32
    %c0_i32_0 = arith.constant 0 : i32
    %c0_i32_1 = arith.constant 0 : i32
    return %c0_i32, %c0_i32_0 : i32, i32
  }
  func.func @transform_7(%arg0: i32) -> (i32, i32) {
    %c0_i32 = arith.constant 0 : i32
    %c0_i32_0 = arith.constant 0 : i32
    return %arg0, %c0_i32 : i32, i32
  }
}

module attributes {stable_mosaic.version = 11 : i64} {
  func.func @actor_kernel(%arg0: i32, %arg1: memref<8x3xf32, #tpu.memory_space<vmem>>, %arg2: memref<3x128xf32, #tpu.memory_space<vmem>>, %arg3: memref<3x128xf32, #tpu.memory_space<vmem>>, %arg4: memref<128x128xf32, #tpu.memory_space<vmem>>, %arg5: memref<3x128xf32, #tpu.memory_space<vmem>>, %arg6: memref<128x128xf32, #tpu.memory_space<vmem>>, %arg7: memref<1x128xf32, #tpu.memory_space<vmem>>, %arg8: memref<8x128xf32, #tpu.memory_space<vmem>>) attributes {dimension_semantics = [#tpu.dimension_semantics<parallel>], iteration_bounds = array<i64: 1>, scalar_prefetch = 0 : i64, scratch_operands = 0 : i64, tpu.core_type = #tpu.core_type<tc>, window_params = [{transform_indices = @transform_0, window_bounds = array<i64: 8, 3>}, {pipeline_mode = #tpu.pipeline_mode<synchronous>, transform_indices = @transform_1, window_bounds = array<i64: 3, 128>}, {pipeline_mode = #tpu.pipeline_mode<synchronous>, transform_indices = @transform_2, window_bounds = array<i64: 3, 128>}, {pipeline_mode = #tpu.pipeline_mode<synchronous>, transform_indices = @transform_3, window_bounds = array<i64: 128, 128>}, {pipeline_mode = #tpu.pipeline_mode<synchronous>, transform_indices = @transform_4, window_bounds = array<i64: 3, 128>}, {pipeline_mode = #tpu.pipeline_mode<synchronous>, transform_indices = @transform_5, window_bounds = array<i64: 128, 128>}, {pipeline_mode = #tpu.pipeline_mode<synchronous>, transform_indices = @transform_6, window_bounds = array<i64: 1, 128>}, {transform_indices = @transform_7, window_bounds = array<i64: 8, 128>}]} {
    %c0 = arith.constant 0 : index
    %c0_0 = arith.constant 0 : index
    %0 = vector.load %arg1[%c0, %c0_0] : memref<8x3xf32, #tpu.memory_space<vmem>>, vector<8x3xf32>
    %c0_1 = arith.constant 0 : index
    %c0_2 = arith.constant 0 : index
    %1 = vector.load %arg2[%c0_1, %c0_2] : memref<3x128xf32, #tpu.memory_space<vmem>>, vector<3x128xf32>
    %cst = arith.constant dense<0.000000e+00> : vector<8x128xf32>
    %2 = tpu.matmul %0, %1, %cst {dimension_numbers = #tpu.dot_dimension_numbers<[1], [0], [0], [1], [0, 0, 1, 1], [], []>} : vector<8x3xf32>, vector<3x128xf32>, vector<8x128xf32> -> vector<8x128xf32>
    %c0_3 = arith.constant 0 : index
    %c0_4 = arith.constant 0 : index
    %3 = vector.load %arg3[%c0_3, %c0_4] : memref<3x128xf32, #tpu.memory_space<vmem>>, vector<1x128xf32>
    %4 = vector.broadcast %3 : vector<1x128xf32> to vector<8x128xf32>
    %5 = arith.addf %2, %4 : vector<8x128xf32>
    %c1 = arith.constant 1 : index
    %c0_5 = arith.constant 0 : index
    %6 = vector.load %arg3[%c1, %c0_5] : memref<3x128xf32, #tpu.memory_space<vmem>>, vector<1x128xf32>
    %c2 = arith.constant 2 : index
    %c0_6 = arith.constant 0 : index
    %7 = vector.load %arg3[%c2, %c0_6] : memref<3x128xf32, #tpu.memory_space<vmem>>, vector<1x128xf32>
    %cst_7 = arith.constant dense<0.000000e+00> : vector<8xf32>
    %8 = vector.multi_reduction <add>, %5, %cst_7 [1] : vector<8x128xf32> to vector<8xf32>
    %9 = vector.shape_cast %8 : vector<8xf32> to vector<8x1xf32>
    %cst_8 = arith.constant 1.562500e-02 : f32
    %10 = vector.broadcast %cst_8 : f32 to vector<8x1xf32>
    %11 = arith.mulf %9, %10 : vector<8x1xf32>
    %12 = arith.mulf %5, %5 : vector<8x128xf32>
    %cst_9 = arith.constant dense<0.000000e+00> : vector<8xf32>
    %13 = vector.multi_reduction <add>, %12, %cst_9 [1] : vector<8x128xf32> to vector<8xf32>
    %14 = vector.shape_cast %13 : vector<8xf32> to vector<8x1xf32>
    %cst_10 = arith.constant 1.562500e-02 : f32
    %15 = vector.broadcast %cst_10 : f32 to vector<8x1xf32>
    %16 = arith.mulf %14, %15 : vector<8x1xf32>
    %17 = arith.mulf %11, %11 : vector<8x1xf32>
    %18 = arith.subf %16, %17 : vector<8x1xf32>
    %cst_11 = arith.constant 0.000000e+00 : f32
    %19 = vector.broadcast %cst_11 : f32 to vector<8x1xf32>
    %20 = arith.maximumf %18, %19 : vector<8x1xf32>
    %21 = vector.broadcast %11 : vector<8x1xf32> to vector<8x128xf32>
    %22 = arith.subf %5, %21 : vector<8x128xf32>
    %cst_12 = arith.constant 9.99999974E-6 : f32
    %23 = vector.broadcast %cst_12 : f32 to vector<8x1xf32>
    %24 = arith.addf %20, %23 : vector<8x1xf32>
    %25 = math.rsqrt %24 : vector<8x1xf32>
    %26 = vector.broadcast %25 : vector<8x1xf32> to vector<8x128xf32>
    %27 = arith.mulf %22, %26 : vector<8x128xf32>
    %28 = vector.broadcast %6 : vector<1x128xf32> to vector<8x128xf32>
    %29 = arith.mulf %27, %28 : vector<8x128xf32>
    %30 = vector.broadcast %7 : vector<1x128xf32> to vector<8x128xf32>
    %31 = arith.addf %29, %30 : vector<8x128xf32>
    %cst_13 = arith.constant 0.000000e+00 : f32
    %32 = vector.broadcast %cst_13 : f32 to vector<8x128xf32>
    %33 = arith.maximumf %31, %32 : vector<8x128xf32>
    %c0_14 = arith.constant 0 : index
    %c0_15 = arith.constant 0 : index
    %34 = vector.load %arg4[%c0_14, %c0_15] : memref<128x128xf32, #tpu.memory_space<vmem>>, vector<128x128xf32>
    %cst_16 = arith.constant dense<0.000000e+00> : vector<8x128xf32>
    %35 = tpu.matmul %33, %34, %cst_16 {dimension_numbers = #tpu.dot_dimension_numbers<[1], [0], [0], [1], [0, 0, 1, 1], [], []>} : vector<8x128xf32>, vector<128x128xf32>, vector<8x128xf32> -> vector<8x128xf32>
    %c0_17 = arith.constant 0 : index
    %c0_18 = arith.constant 0 : index
    %36 = vector.load %arg5[%c0_17, %c0_18] : memref<3x128xf32, #tpu.memory_space<vmem>>, vector<1x128xf32>
    %37 = vector.broadcast %36 : vector<1x128xf32> to vector<8x128xf32>
    %38 = arith.addf %35, %37 : vector<8x128xf32>
    %c1_19 = arith.constant 1 : index
    %c0_20 = arith.constant 0 : index
    %39 = vector.load %arg5[%c1_19, %c0_20] : memref<3x128xf32, #tpu.memory_space<vmem>>, vector<1x128xf32>
    %c2_21 = arith.constant 2 : index
    %c0_22 = arith.constant 0 : index
    %40 = vector.load %arg5[%c2_21, %c0_22] : memref<3x128xf32, #tpu.memory_space<vmem>>, vector<1x128xf32>
    %cst_23 = arith.constant dense<0.000000e+00> : vector<8xf32>
    %41 = vector.multi_reduction <add>, %38, %cst_23 [1] : vector<8x128xf32> to vector<8xf32>
    %42 = vector.shape_cast %41 : vector<8xf32> to vector<8x1xf32>
    %cst_24 = arith.constant 3.125000e-02 : f32
    %43 = vector.broadcast %cst_24 : f32 to vector<8x1xf32>
    %44 = arith.mulf %42, %43 : vector<8x1xf32>
    %45 = arith.mulf %38, %38 : vector<8x128xf32>
    %cst_25 = arith.constant dense<0.000000e+00> : vector<8xf32>
    %46 = vector.multi_reduction <add>, %45, %cst_25 [1] : vector<8x128xf32> to vector<8xf32>
    %47 = vector.shape_cast %46 : vector<8xf32> to vector<8x1xf32>
    %cst_26 = arith.constant 3.125000e-02 : f32
    %48 = vector.broadcast %cst_26 : f32 to vector<8x1xf32>
    %49 = arith.mulf %47, %48 : vector<8x1xf32>
    %50 = arith.mulf %44, %44 : vector<8x1xf32>
    %51 = arith.subf %49, %50 : vector<8x1xf32>
    %cst_27 = arith.constant 0.000000e+00 : f32
    %52 = vector.broadcast %cst_27 : f32 to vector<8x1xf32>
    %53 = arith.maximumf %51, %52 : vector<8x1xf32>
    %54 = vector.broadcast %44 : vector<8x1xf32> to vector<8x128xf32>
    %55 = arith.subf %38, %54 : vector<8x128xf32>
    %cst_28 = arith.constant 9.99999974E-6 : f32
    %56 = vector.broadcast %cst_28 : f32 to vector<8x1xf32>
    %57 = arith.addf %53, %56 : vector<8x1xf32>
    %58 = math.rsqrt %57 : vector<8x1xf32>
    %59 = vector.broadcast %58 : vector<8x1xf32> to vector<8x128xf32>
    %60 = arith.mulf %55, %59 : vector<8x128xf32>
    %61 = vector.broadcast %39 : vector<1x128xf32> to vector<8x128xf32>
    %62 = arith.mulf %60, %61 : vector<8x128xf32>
    %63 = vector.broadcast %40 : vector<1x128xf32> to vector<8x128xf32>
    %64 = arith.addf %62, %63 : vector<8x128xf32>
    %cst_29 = arith.constant 0.000000e+00 : f32
    %65 = vector.broadcast %cst_29 : f32 to vector<8x128xf32>
    %66 = arith.maximumf %64, %65 : vector<8x128xf32>
    %c0_30 = arith.constant 0 : index
    %c0_31 = arith.constant 0 : index
    %67 = vector.load %arg6[%c0_30, %c0_31] : memref<128x128xf32, #tpu.memory_space<vmem>>, vector<128x128xf32>
    %cst_32 = arith.constant dense<0.000000e+00> : vector<8x128xf32>
    %68 = tpu.matmul %66, %67, %cst_32 {dimension_numbers = #tpu.dot_dimension_numbers<[1], [0], [0], [1], [0, 0, 1, 1], [], []>} : vector<8x128xf32>, vector<128x128xf32>, vector<8x128xf32> -> vector<8x128xf32>
    %c0_33 = arith.constant 0 : index
    %c0_34 = arith.constant 0 : index
    %69 = vector.load %arg7[%c0_33, %c0_34] : memref<1x128xf32, #tpu.memory_space<vmem>>, vector<1x128xf32>
    %70 = vector.broadcast %69 : vector<1x128xf32> to vector<8x128xf32>
    %71 = arith.addf %68, %70 : vector<8x128xf32>
    %72 = math.tanh %71 : vector<8x128xf32>
    %c0_35 = arith.constant 0 : index
    %c0_36 = arith.constant 0 : index
    %73 = vector.load %arg8[%c0_35, %c0_36] : memref<8x128xf32, #tpu.memory_space<vmem>>, vector<8x128xf32>
    tpu.vector_store %arg8[%c0_35, %c0_36], %72 {strides = array<i32>} : memref<8x128xf32, #tpu.memory_space<vmem>>, vector<8x128xf32>,
    return
  }
  func.func @transform_0(%arg0: i32) -> (i32, i32) {
    %c0_i32 = arith.constant 0 : i32
    %c0_i32_0 = arith.constant 0 : i32
    return %arg0, %c0_i32 : i32, i32
  }
  func.func @transform_1(%arg0: i32) -> (i32, i32) {
    %c0_i32 = arith.constant 0 : i32
    %c0_i32_0 = arith.constant 0 : i32
    %c0_i32_1 = arith.constant 0 : i32
    return %c0_i32, %c0_i32_0 : i32, i32
  }
  func.func @transform_2(%arg0: i32) -> (i32, i32) {
    %c0_i32 = arith.constant 0 : i32
    %c0_i32_0 = arith.constant 0 : i32
    %c0_i32_1 = arith.constant 0 : i32
    return %c0_i32, %c0_i32_0 : i32, i32
  }
  func.func @transform_3(%arg0: i32) -> (i32, i32) {
    %c0_i32 = arith.constant 0 : i32
    %c0_i32_0 = arith.constant 0 : i32
    %c0_i32_1 = arith.constant 0 : i32
    return %c0_i32, %c0_i32_0 : i32, i32
  }
  func.func @transform_4(%arg0: i32) -> (i32, i32) {
    %c0_i32 = arith.constant 0 : i32
    %c0_i32_0 = arith.constant 0 : i32
    %c0_i32_1 = arith.constant 0 : i32
    return %c0_i32, %c0_i32_0 : i32, i32
  }
  func.func @transform_5(%arg0: i32) -> (i32, i32) {
    %c0_i32 = arith.constant 0 : i32
    %c0_i32_0 = arith.constant 0 : i32
    %c0_i32_1 = arith.constant 0 : i32
    return %c0_i32, %c0_i32_0 : i32, i32
  }
  func.func @transform_6(%arg0: i32) -> (i32, i32) {
    %c0_i32 = arith.constant 0 : i32
    %c0_i32_0 = arith.constant 0 : i32
    %c0_i32_1 = arith.constant 0 : i32
    return %c0_i32, %c0_i32_0 : i32, i32
  }
  func.func @transform_7(%arg0: i32) -> (i32, i32) {
    %c0_i32 = arith.constant 0 : i32
    %c0_i32_0 = arith.constant 0 : i32
    return %arg0, %c0_i32 : i32, i32
  }
}

</mosaic_0001>

<bundles_post_ra>
// kernel: tpu_custom_call.1
= control target key start
LH: loop header
LB: loop body
LE: loop exit
PB: predicated region body
PF: predicated region fallthrough
CT: control target
= control target key end

     0   :  { %12 = vsyncpa [#allocation3], 0  ;;  %s777_s0 = inlined_call_operand.vmem [shape: f32[8,3], index: 0, kind: input, shape index: {}]   ;;  %s778_s1 = inlined_call_operand.vmem [shape: f32[3,128], index: 1, kind: input, shape index: {}]   ;;  %s779_s2 = inlined_call_operand.vmem [shape: f32[3,128], index: 2, kind: input, shape index: {}]   ;;  %s780_s3 = inlined_call_operand.hbm [shape: f32[128,128], index: 3, kind: input, shape index: {}]   ;;  %s781_s4 = inlined_call_operand.vmem [shape: f32[3,128], index: 4, kind: input, shape index: {}]   ;;  %s782_s5 = inlined_call_operand.hbm [shape: f32[128,128], index: 5, kind: input, shape index: {}]   ;;  %s783_s6 = inlined_call_operand.vmem [shape: f32[1,128], index: 6, kind: input, shape index: {}]   ;;  %s784_s7 = inlined_call_operand.hbm [shape: f32[8,128], index: 7, kind: output, shape index: {}]  }
   0x1   :  { %13 = vsyncpa [#allocation6], 0 }
   0x2   :  { %14 = vsyncpa [#allocation4], 0  ;;  %s650_s24 = smov [#allocation2]   ;;  %s578_s28 = scalar_lea.hbm %s780_s3, 2048 }
   0x3   :  { %s26_s25 = sshll.u32 %s650_s24, 4  ;;  %p579_p0 = scmp.ne.s32.totalorder %s780_s3, %s578_s28  ;;  %s27_s25 = int_to_ptr.vmem [resolvable:$true] %s26_s25 }
   0x4   :  { %p582_p1 = scmp.lt.u32.totalorder %s578_s28, %s780_s3 }
   0x6   :  { %p584_p2 = pnand %p582_p1, %p579_p0 }
   0x8   :  { %587 = shalt.err (!%p584_p2)
}
   0x9   :  { %s588_s10 = scalar_lea.vmem %s27_s25, 2048  ;;  %p593_p4 = scmp.lt.s32.totalorder %s27_s25, %s27_s25 }
   0xa   :  { %p589_p3 = scmp.ne.s32.totalorder %s27_s25, %s588_s10  ;;  %p594_p5 = scmp.lt.s32.totalorder %s588_s10, %s588_s10 }
   0xc   :  { %p595_p6 = por %p594_p5, %p593_p4 }
   0xe   :  { %p596_p7 = pnand %p595_p6, %p589_p3 }
  0x10   :  { %599 = shalt.err (!%p596_p7)
}
  0x11   :  { %s651_s11 = smov 128   ;;  %s652_s12 = smov 8  }
  0x12   :  { %32 = dma.hbm_to_vmem [thread:$0]  %s780_s3, 2048, %s27_s25, [#allocation3], %s651_s11, %s651_s11, %s652_s12  }
  0x13   :  { %s653_s15 = smov [#allocation5]   ;;  %s600_s19 = scalar_lea.hbm %s782_s5, 2048 }
  0x14   :  { %s40_s16 = sshll.u32 %s653_s15, 4  ;;  %p601_p8 = scmp.ne.s32.totalorder %s782_s5, %s600_s19  ;;  %s41_s16 = int_to_ptr.vmem [resolvable:$true] %s40_s16 }
  0x15   :  { %p604_p9 = scmp.lt.u32.totalorder %s600_s19, %s782_s5 }
  0x17   :  { %p606_p10 = pnand %p604_p9, %p601_p8 }
  0x19   :  { %609 = shalt.err (!%p606_p10)
}
  0x1a   :  { %s610_s24 = scalar_lea.vmem %s41_s16, 2048  ;;  %p615_p12 = scmp.lt.s32.totalorder %s41_s16, %s41_s16 }
  0x1b   :  { %p611_p11 = scmp.ne.s32.totalorder %s41_s16, %s610_s24  ;;  %p616_p13 = scmp.lt.s32.totalorder %s610_s24, %s610_s24 }
  0x1d   :  { %p617_p0 = por %p616_p13, %p615_p12 }
  0x1f   :  { %p618_p1 = pnand %p617_p0, %p611_p11 }
  0x21   :  { %621 = shalt.err (!%p618_p1)
}
  0x22   :  { %46 = dma.hbm_to_vmem [thread:$0]  %s782_s5, 2048, %s41_s16, [#allocation6], %s651_s11, %s651_s11, %s652_s12  }
  0x23   :  { %644 = dma.done.wait [#allocation3], 2048  }
  0x24   :  { %645 = vsyncadd [#allocation3], 4294965248 }
  0x25   :  { %646 = dma.done.wait [#allocation6], 2048  }
  0x26   :  { %647 = vsyncadd [#allocation6], 4294965248  ;;  %v654_v0 = vmov 0.0   ;;  %vm655_vm0 = vmmov 0   ;;  %vm66_vm1 = vcmask 1042432   ;;  %vm62_vm2 = vcmask 23552  }
  0x27   :  { %441 = vmatprep.subr.mxu0 %v654_v0  ;;  %443 = vmatprep.mubr.msk.f32.mxu0 %vm655_vm0, %v654_v0  ;;  %v56_v1 = vld [vmem:[%s778_s1] sm:$0x7]  ;;  %v656_v3 = vmov 0.0|0.0   ;;  %v168_v10 = vld [vmem:[#allocation2 + $0x8] sm:$0xff]  ;;  %v169_v12 = vld [vmem:[#allocation2 + $0x10] sm:$0xff]  ;;  %s657_s17 = smov [#allocation7]  }
  0x28   :  { %478 = vmatprep.mubr.msk.f32.mxu1 %vm655_vm0, %v654_v0  ;;  %v55_v2 = vld [vmem:[%s777_s0] sm:$0xff]  ;;  %442 = vmatpush3.msk.msra.mxu0 %vm66_vm1, %v56_v1  ;;  %v170_v13 = vld [vmem:[#allocation2 + $0x18] sm:$0xff]  ;;  %v172_v16 = vld [vmem:[#allocation2 + $0x28] sm:$0xff]  ;;  %s386_s18 = sshll.u32 %s657_s17, 4  ;;  %s387_s18 = int_to_ptr.vmem [resolvable:$true] %s386_s18 }
  0x29   :  { %444 = vmatmul.mubr.msk.f32.vlgmr.msra.gmra.mrb[0].mxu0 %vm62_vm2, %v55_v2  ;;  %516 = vmatprep.subr.bf16.mxu1 %v656_v3  ;;  %v396_v4 = vld [vmem:[%s779_s2] ss:$0 sm:$0xff]  ;;  %v520_v14 = vpack.c.bf16 %v170_v13, %v169_v12  ;;  %v173_v18 = vld [vmem:[#allocation2 + $0x30] sm:$0xff]  ;;  %v174_v19 = vld [vmem:[#allocation2 + $0x38] sm:$0xff]  ;;  %s622_s19 = scalar_lea.vmem %s387_s18, 128  ;;  %p627_p3 = scmp.lt.s32.totalorder %s387_s18, %s387_s18 }
  0x2a   :  { %513 = vmatprep.mubr.msk.f32.mxu0 %vm655_vm0, %v654_v0  ;;  %540 = vmatprep.subr.bf16.mxu0 %v656_v3  ;;  %v167_v9 = vld [vmem:[#allocation2] sm:$0xff]  ;;  %v526_v20 = vpack.c.bf16 %v174_v19, %v173_v18  ;;  %v176_v22 = vld [vmem:[#allocation2 + $0x48] sm:$0xff]  ;;  %v177_v24 = vld [vmem:[#allocation2 + $0x50] sm:$0xff]  ;;  %p623_p2 = scmp.ne.s32.totalorder %s387_s18, %s622_s19  ;;  %p628_p4 = scmp.lt.s32.totalorder %s622_s19, %s622_s19 }
  0x2b   :  { %v517_v11 = vpack.c.bf16 %v168_v10, %v167_v9  ;;  %v171_v15 = vld [vmem:[#allocation2 + $0x20] sm:$0xff]  ;;  %v178_v25 = vld [vmem:[#allocation2 + $0x58] sm:$0xff]  ;;  %v180_v28 = vld [vmem:[#allocation2 + $0x68] sm:$0xff] }
  0x2c   :  { %v523_v17 = vpack.c.bf16 %v172_v16, %v171_v15  ;;  %v175_v21 = vld [vmem:[#allocation2 + $0x40] sm:$0xff]  ;;  %v532_v26 = vpack.c.bf16 %v178_v25, %v177_v24  ;;  %v181_v30 = vld [vmem:[#allocation2 + $0x70] sm:$0xff]  ;;  %v182_v31 = vld [vmem:[#allocation2 + $0x78] sm:$0xff]  ;;  %p629_p5 = por %p628_p4, %p627_p3 }
  0x2d   :  { %518 = vmatpush3.bf16.msra.mxu1 %v517_v11  ;;  %v529_v23 = vpack.c.bf16 %v176_v22, %v175_v21  ;;  %v179_v27 = vld [vmem:[#allocation2 + $0x60] sm:$0xff]  ;;  %v538_v32 = vpack.c.bf16 %v182_v31, %v181_v30  ;;  %v286_v55 = vld [vmem:[#allocation5 + $0x8] sm:$0xff]  ;;  %v287_v57 = vld [vmem:[#allocation5 + $0x10] sm:$0xff] }
  0x2e   :  { %519 = vmatprep.subr.bf16.mxu1 %v656_v3  ;;  %v535_v29 = vpack.c.bf16 %v180_v28, %v179_v27  ;;  %v399_v43 = vld [vmem:[%s779_s2 + $0x1] ss:$0 sm:$0xff]  ;;  %v400_v45 = vld [vmem:[%s779_s2 + $0x2] ss:$0 sm:$0xff]  ;;  %v401_v49 = vld [vmem:[%s781_s4] ss:$0 sm:$0xff]  ;;  %p630_p6 = pnand %p629_p5, %p623_p2 }
  0x2f   :  { %v285_v54 = vld [vmem:[#allocation5] sm:$0xff]  ;;  %v288_v58 = vld [vmem:[#allocation5 + $0x18] sm:$0xff]  ;;  %v290_v61 = vld [vmem:[#allocation5 + $0x28] sm:$0xff] }
  0x30   :  { %v541_v56 = vpack.c.bf16 %v286_v55, %v285_v54  ;;  %v544_v59 = vpack.c.bf16 %v288_v58, %v287_v57  ;;  %v289_v60 = vld [vmem:[#allocation5 + $0x20] sm:$0xff]  ;;  %v291_v63 = vld [vmem:[#allocation5 + $0x30] sm:$0xff]  ;;  %v292_v0 = vld [vmem:[#allocation5 + $0x38] sm:$0xff] }
  0x31   :  { %521 = vmatpush3.bf16.msra.mxu1 %v520_v14  ;;  %v547_v62 = vpack.c.bf16 %v290_v61, %v289_v60  ;;  %v550_v1 = vpack.c.bf16 %v292_v0, %v291_v63  ;;  %v293_v2 = vld [vmem:[#allocation5 + $0x40] sm:$0xff]  ;;  %v298_v10 = vld [vmem:[#allocation5 + $0x68] sm:$0xff]  ;;  %v299_v12 = vld [vmem:[#allocation5 + $0x70] sm:$0xff] }
  0x32   :  { %522 = vmatprep.subr.bf16.mxu1 %v656_v3  ;;  %542 = vmatpush3.bf16.msra.mxu0 %v541_v56  ;;  %v297_v9 = vld [vmem:[#allocation5 + $0x60] sm:$0xff]  ;;  %v300_v13 = vld [vmem:[#allocation5 + $0x78] sm:$0xff] }
  0x33   :  { %543 = vmatprep.subr.bf16.mxu0 %v656_v3  ;;  %v559_v11 = vpack.c.bf16 %v298_v10, %v297_v9  ;;  %v562_v14 = vpack.c.bf16 %v300_v13, %v299_v12  ;;  %v402_v25 = vld [vmem:[%s781_s4 + $0x1] ss:$0 sm:$0xff]  ;;  %v404_v30 = vld [vmem:[%s783_s6] ss:$0 sm:$0xff] }
  0x35   :  { %524 = vmatpush3.bf16.msra.mxu1 %v523_v17 }
  0x36   :  { %525 = vmatprep.subr.bf16.mxu1 %v656_v3  ;;  %545 = vmatpush3.bf16.msra.mxu0 %v544_v59 }
  0x37   :  { %546 = vmatprep.subr.bf16.mxu0 %v656_v3 }
  0x39   :  { %527 = vmatpush3.bf16.msra.mxu1 %v526_v20 }
  0x3a   :  { %528 = vmatprep.subr.bf16.mxu1 %v656_v3  ;;  %548 = vmatpush3.bf16.msra.mxu0 %v547_v62 }
  0x3b   :  { %549 = vmatprep.subr.bf16.mxu0 %v656_v3 }
  0x3d   :  { %530 = vmatpush3.bf16.msra.mxu1 %v529_v23 }
  0x3e   :  { %531 = vmatprep.subr.bf16.mxu1 %v656_v3  ;;  %551 = vmatpush3.bf16.msra.mxu0 %v550_v1 }
  0x3f   :  { %552 = vmatprep.subr.bf16.mxu0 %v656_v3 }
  0x41   :  { %533 = vmatpush3.bf16.msra.mxu1 %v532_v26 }
  0x42   :  { %534 = vmatprep.subr.bf16.mxu1 %v656_v3 }
  0x45   :  { %536 = vmatpush3.bf16.msra.mxu1 %v535_v29 }
  0x46   :  { %537 = vmatprep.subr.bf16.mxu1 %v656_v3 }
  0x49   :  { %539 = vmatpush3.bf16.msra.mxu1 %v538_v32 }
  0xfc   :  { %v136_v5 = vpop.f32.mrb[0].mxu0 }
  0xfd   :  { %v137_v6 = vadd.f32 %v396_v4, %v136_v5  ;;  %v445_v7 = vpop.f32.mrb[1].mxu0  ;;  %v294_v4 = vld [vmem:[#allocation5 + $0x48] sm:$0xff] }
  0xfe   :  { %v553_v5 = vpack.c.bf16 %v294_v4, %v293_v2  ;;  %v296_v7 = vld [vmem:[#allocation5 + $0x58] sm:$0xff] }
  0xff   :  { %142 = vadd.xlane.f32.xlu0 %v137_v6  ;;  %v145_v8 = vmul.f32 %v137_v6, %v137_v6 }
 0x100   :  { %554 = vmatpush3.bf16.msra.mxu0 %v553_v5 }
 0x101   :  { %555 = vmatprep.subr.bf16.mxu0 %v656_v3 }
 0x103   :  { %146 = vadd.xlane.f32.xlu0 %v145_v8 }
 0x18c   :  { %v143_v33 = vpop.xlane.xlu0 %142 }
 0x18d   :  { %v144_v34 = vmul.f32 0.015625, %v143_v33 }
 0x18f   :  { %v149_v36 = vmul.f32 %v144_v34, %v144_v34  ;;  %v152_v41 = vsub.f32 %v137_v6, %v144_v34  ;;  %v295_v6 = vld [vmem:[#allocation5 + $0x50] sm:$0xff] }
 0x190   :  { %v147_v35 = vpop.xlane.xlu0 %146  ;;  %v556_v8 = vpack.c.bf16 %v296_v7, %v295_v6 }
 0x191   :  { %v148_v37 = vmul.f32 0.015625, %v147_v35 }
 0x192   :  { %557 = vmatpush3.bf16.msra.mxu0 %v556_v8 }
 0x193   :  { %v150_v38 = vsub.f32 %v148_v37, %v149_v36  ;;  %558 = vmatprep.subr.bf16.mxu0 %v656_v3 }
 0x195   :  { %v151_v39 = vmax.f32 %v150_v38, 0.0 }
 0x196   :  { %560 = vmatpush3.bf16.msra.mxu0 %v559_v11 }
 0x197   :  { %v153_v40 = vadd.f32 1e-05, %v151_v39  ;;  %561 = vmatprep.subr.bf16.mxu0 %v656_v3  ;;  %v403_v3 = vld [vmem:[%s781_s4 + $0x2] ss:$0 sm:$0xff] }
 0x199   :  { %572 = vrsqrt.f32 %v153_v40 }
 0x19a   :  { %563 = vmatpush3.bf16.msra.mxu0 %v562_v14 }
 0x1a3   :  { %v573_v42 = vpop.eup %572 }
 0x1a4   :  { %v155_v44 = vmul.f32 %v573_v42, %v152_v41 }
 0x1a6   :  { %v160_v46 = vmul.f32 %v399_v43, %v155_v44 }
 0x1a8   :  { %v165_v47 = vadd.f32 %v400_v45, %v160_v46 }
 0x1aa   :  { %v166_v48 = vmax.f32 %v165_v47, 0.0 }
 0x1ac   :  { %479 = vmatmul.mubr.f32.vlgmr.msra.gmra.mrb[0].mxu1 %v166_v48 }
 0x27f   :  { %v254_v50 = vpop.f32.mrb[0].mxu1 }
 0x280   :  { %v255_v51 = vadd.f32 %v401_v49, %v254_v50  ;;  %v480_v52 = vpop.f32.mrb[1].mxu1 }
 0x282   :  { %260 = vadd.xlane.f32.xlu1 %v255_v51  ;;  %v263_v53 = vmul.f32 %v255_v51, %v255_v51 }
 0x286   :  { %264 = vadd.xlane.f32.xlu1 %v263_v53 }
 0x30f   :  { %v261_v15 = vpop.xlane.xlu1 %260 }
 0x310   :  { %v262_v16 = vmul.f32 0.03125, %v261_v15 }
 0x312   :  { %v267_v18 = vmul.f32 %v262_v16, %v262_v16  ;;  %v270_v23 = vsub.f32 %v255_v51, %v262_v16 }
 0x313   :  { %v265_v17 = vpop.xlane.xlu1 %264 }
 0x314   :  { %v266_v19 = vmul.f32 0.03125, %v265_v17 }
 0x316   :  { %v268_v20 = vsub.f32 %v266_v19, %v267_v18 }
 0x318   :  { %v269_v21 = vmax.f32 %v268_v20, 0.0 }
 0x31a   :  { %v271_v22 = vadd.f32 1e-05, %v269_v21 }
 0x31c   :  { %574 = vrsqrt.f32 %v271_v22 }
 0x326   :  { %v575_v24 = vpop.eup %574 }
 0x327   :  { %v273_v26 = vmul.f32 %v575_v24, %v270_v23 }
 0x329   :  { %v278_v27 = vmul.f32 %v402_v25, %v273_v26 }
 0x32b   :  { %v283_v28 = vadd.f32 %v403_v3, %v278_v27 }
 0x32d   :  { %v284_v29 = vmax.f32 %v283_v28, 0.0 }
 0x32f   :  { %514 = vmatmul.mubr.f32.vlgmr.msra.gmra.mrb[2].mxu0 %v284_v29 }
 0x402   :  { %v374_v31 = vpop.f32.mrb[2].mxu0 }
 0x403   :  { %v375_v32 = vadd.f32 %v404_v30, %v374_v31  ;;  %v515_v33 = vpop.f32.mrb[3].mxu0 }
 0x405   :  { %576 = vtanh.f32 %v375_v32 }
 0x40f   :  { %v577_v34 = vpop.eup %576 }
 0x410   :  { %379 = vst [vmem:[#allocation7] sm:$0xff] %v577_v34 }
 0x411   :  { %633 = shalt.err (!%p630_p6)
}
 0x412   :  { %s634_s6 = scalar_lea.hbm %s784_s7, 128 }
 0x413   :  { %p635_p7 = scmp.ne.s32.totalorder %s784_s7, %s634_s6  ;;  %p638_p8 = scmp.lt.u32.totalorder %s634_s6, %s784_s7 }
 0x415   :  { %p640_p9 = pnand %p638_p8, %p635_p7 }
 0x417   :  { %643 = shalt.err (!%p640_p9)
}
 0x418   :  { %389 = dma.vmem_to_hbm [thread:$0]  %s387_s18, 128, %s784_s7, [#allocation4]  }
 0x419   :  { %648 = dma.done.wait [#allocation4], 128  }
 0x41a   :  { %649 = vsyncadd [#allocation4], 4294967168 }
 0x41b   :  { %393 = vsyncpa [#allocation3], 1 }
 0x41c   :  { %394 = vsyncpa [#allocation6], 1 }
 0x41d   :  { %395 = vsyncpa [#allocation4], 1 }

// kernel: tpu_custom_call.1
= control target key start
LH: loop header
LB: loop body
LE: loop exit
PB: predicated region body
PF: predicated region fallthrough
CT: control target
= control target key end

     0   :  { %12 = vsyncpa [#allocation3], 0  ;;  %s777_s0 = inlined_call_operand.vmem [shape: f32[8,3], index: 0, kind: input, shape index: {}]   ;;  %s778_s1 = inlined_call_operand.vmem [shape: f32[3,128], index: 1, kind: input, shape index: {}]   ;;  %s779_s2 = inlined_call_operand.vmem [shape: f32[3,128], index: 2, kind: input, shape index: {}]   ;;  %s780_s3 = inlined_call_operand.hbm [shape: f32[128,128], index: 3, kind: input, shape index: {}]   ;;  %s781_s4 = inlined_call_operand.vmem [shape: f32[3,128], index: 4, kind: input, shape index: {}]   ;;  %s782_s5 = inlined_call_operand.hbm [shape: f32[128,128], index: 5, kind: input, shape index: {}]   ;;  %s783_s6 = inlined_call_operand.vmem [shape: f32[1,128], index: 6, kind: input, shape index: {}]   ;;  %s784_s7 = inlined_call_operand.hbm [shape: f32[8,128], index: 7, kind: output, shape index: {}]  }
   0x1   :  { %13 = vsyncpa [#allocation6], 0 }
   0x2   :  { %14 = vsyncpa [#allocation4], 0  ;;  %s650_s24 = smov [#allocation2]   ;;  %s578_s28 = scalar_lea.hbm %s780_s3, 2048 }
   0x3   :  { %s26_s25 = sshll.u32 %s650_s24, 4  ;;  %p579_p0 = scmp.ne.s32.totalorder %s780_s3, %s578_s28  ;;  %s27_s25 = int_to_ptr.vmem [resolvable:$true] %s26_s25 }
   0x4   :  { %p582_p1 = scmp.lt.u32.totalorder %s578_s28, %s780_s3 }
   0x6   :  { %p584_p2 = pnand %p582_p1, %p579_p0 }
   0x8   :  { %587 = shalt.err (!%p584_p2)
}
   0x9   :  { %s588_s10 = scalar_lea.vmem %s27_s25, 2048  ;;  %p593_p4 = scmp.lt.s32.totalorder %s27_s25, %s27_s25 }
   0xa   :  { %p589_p3 = scmp.ne.s32.totalorder %s27_s25, %s588_s10  ;;  %p594_p5 = scmp.lt.s32.totalorder %s588_s10, %s588_s10 }
   0xc   :  { %p595_p6 = por %p594_p5, %p593_p4 }
   0xe   :  { %p596_p7 = pnand %p595_p6, %p589_p3 }
  0x10   :  { %599 = shalt.err (!%p596_p7)
}
  0x11   :  { %s651_s11 = smov 128   ;;  %s652_s12 = smov 8  }
  0x12   :  { %32 = dma.hbm_to_vmem [thread:$0]  %s780_s3, 2048, %s27_s25, [#allocation3], %s651_s11, %s651_s11, %s652_s12  }
  0x13   :  { %s653_s15 = smov [#allocation5]   ;;  %s600_s19 = scalar_lea.hbm %s782_s5, 2048 }
  0x14   :  { %s40_s16 = sshll.u32 %s653_s15, 4  ;;  %p601_p8 = scmp.ne.s32.totalorder %s782_s5, %s600_s19  ;;  %s41_s16 = int_to_ptr.vmem [resolvable:$true] %s40_s16 }
  0x15   :  { %p604_p9 = scmp.lt.u32.totalorder %s600_s19, %s782_s5 }
  0x17   :  { %p606_p10 = pnand %p604_p9, %p601_p8 }
  0x19   :  { %609 = shalt.err (!%p606_p10)
}
  0x1a   :  { %s610_s24 = scalar_lea.vmem %s41_s16, 2048  ;;  %p615_p12 = scmp.lt.s32.totalorder %s41_s16, %s41_s16 }
  0x1b   :  { %p611_p11 = scmp.ne.s32.totalorder %s41_s16, %s610_s24  ;;  %p616_p13 = scmp.lt.s32.totalorder %s610_s24, %s610_s24 }
  0x1d   :  { %p617_p0 = por %p616_p13, %p615_p12 }
  0x1f   :  { %p618_p1 = pnand %p617_p0, %p611_p11 }
  0x21   :  { %621 = shalt.err (!%p618_p1)
}
  0x22   :  { %46 = dma.hbm_to_vmem [thread:$0]  %s782_s5, 2048, %s41_s16, [#allocation6], %s651_s11, %s651_s11, %s652_s12  }
  0x23   :  { %644 = dma.done.wait [#allocation3], 2048  }
  0x24   :  { %645 = vsyncadd [#allocation3], 4294965248 }
  0x25   :  { %646 = dma.done.wait [#allocation6], 2048  }
  0x26   :  { %647 = vsyncadd [#allocation6], 4294965248  ;;  %v654_v0 = vmov 0.0   ;;  %vm655_vm0 = vmmov 0   ;;  %vm66_vm1 = vcmask 1042432   ;;  %vm62_vm2 = vcmask 23552  }
  0x27   :  { %441 = vmatprep.subr.mxu0 %v654_v0  ;;  %443 = vmatprep.mubr.msk.f32.mxu0 %vm655_vm0, %v654_v0  ;;  %v56_v1 = vld [vmem:[%s778_s1] sm:$0x7]  ;;  %v656_v3 = vmov 0.0|0.0   ;;  %v168_v10 = vld [vmem:[#allocation2 + $0x8] sm:$0xff]  ;;  %v169_v12 = vld [vmem:[#allocation2 + $0x10] sm:$0xff]  ;;  %s657_s17 = smov [#allocation7]  }
  0x28   :  { %478 = vmatprep.mubr.msk.f32.mxu1 %vm655_vm0, %v654_v0  ;;  %v55_v2 = vld [vmem:[%s777_s0] sm:$0xff]  ;;  %442 = vmatpush3.msk.msra.mxu0 %vm66_vm1, %v56_v1  ;;  %v170_v13 = vld [vmem:[#allocation2 + $0x18] sm:$0xff]  ;;  %v172_v16 = vld [vmem:[#allocation2 + $0x28] sm:$0xff]  ;;  %s386_s18 = sshll.u32 %s657_s17, 4  ;;  %s387_s18 = int_to_ptr.vmem [resolvable:$true] %s386_s18 }
  0x29   :  { %444 = vmatmul.mubr.msk.f32.vlgmr.msra.gmra.mrb[0].mxu0 %vm62_vm2, %v55_v2  ;;  %516 = vmatprep.subr.bf16.mxu1 %v656_v3  ;;  %v396_v4 = vld [vmem:[%s779_s2] ss:$0 sm:$0xff]  ;;  %v520_v14 = vpack.c.bf16 %v170_v13, %v169_v12  ;;  %v173_v18 = vld [vmem:[#allocation2 + $0x30] sm:$0xff]  ;;  %v174_v19 = vld [vmem:[#allocation2 + $0x38] sm:$0xff]  ;;  %s622_s19 = scalar_lea.vmem %s387_s18, 128  ;;  %p627_p3 = scmp.lt.s32.totalorder %s387_s18, %s387_s18 }
  0x2a   :  { %513 = vmatprep.mubr.msk.f32.mxu0 %vm655_vm0, %v654_v0  ;;  %540 = vmatprep.subr.bf16.mxu0 %v656_v3  ;;  %v167_v9 = vld [vmem:[#allocation2] sm:$0xff]  ;;  %v526_v20 = vpack.c.bf16 %v174_v19, %v173_v18  ;;  %v176_v22 = vld [vmem:[#allocation2 + $0x48] sm:$0xff]  ;;  %v177_v24 = vld [vmem:[#allocation2 + $0x50] sm:$0xff]  ;;  %p623_p2 = scmp.ne.s32.totalorder %s387_s18, %s622_s19  ;;  %p628_p4 = scmp.lt.s32.totalorder %s622_s19, %s622_s19 }
  0x2b   :  { %v517_v11 = vpack.c.bf16 %v168_v10, %v167_v9  ;;  %v171_v15 = vld [vmem:[#allocation2 + $0x20] sm:$0xff]  ;;  %v178_v25 = vld [vmem:[#allocation2 + $0x58] sm:$0xff]  ;;  %v180_v28 = vld [vmem:[#allocation2 + $0x68] sm:$0xff] }
  0x2c   :  { %v523_v17 = vpack.c.bf16 %v172_v16, %v171_v15  ;;  %v175_v21 = vld [vmem:[#allocation2 + $0x40] sm:$0xff]  ;;  %v532_v26 = vpack.c.bf16 %v178_v25, %v177_v24  ;;  %v181_v30 = vld [vmem:[#allocation2 + $0x70] sm:$0xff]  ;;  %v182_v31 = vld [vmem:[#allocation2 + $0x78] sm:$0xff]  ;;  %p629_p5 = por %p628_p4, %p627_p3 }
  0x2d   :  { %518 = vmatpush3.bf16.msra.mxu1 %v517_v11  ;;  %v529_v23 = vpack.c.bf16 %v176_v22, %v175_v21  ;;  %v179_v27 = vld [vmem:[#allocation2 + $0x60] sm:$0xff]  ;;  %v538_v32 = vpack.c.bf16 %v182_v31, %v181_v30  ;;  %v286_v55 = vld [vmem:[#allocation5 + $0x8] sm:$0xff]  ;;  %v287_v57 = vld [vmem:[#allocation5 + $0x10] sm:$0xff] }
  0x2e   :  { %519 = vmatprep.subr.bf16.mxu1 %v656_v3  ;;  %v535_v29 = vpack.c.bf16 %v180_v28, %v179_v27  ;;  %v399_v43 = vld [vmem:[%s779_s2 + $0x1] ss:$0 sm:$0xff]  ;;  %v400_v45 = vld [vmem:[%s779_s2 + $0x2] ss:$0 sm:$0xff]  ;;  %v401_v49 = vld [vmem:[%s781_s4] ss:$0 sm:$0xff]  ;;  %p630_p6 = pnand %p629_p5, %p623_p2 }
  0x2f   :  { %v285_v54 = vld [vmem:[#allocation5] sm:$0xff]  ;;  %v288_v58 = vld [vmem:[#allocation5 + $0x18] sm:$0xff]  ;;  %v290_v61 = vld [vmem:[#allocation5 + $0x28] sm:$0xff] }
  0x30   :  { %v541_v56 = vpack.c.bf16 %v286_v55, %v285_v54  ;;  %v544_v59 = vpack.c.bf16 %v288_v58, %v287_v57  ;;  %v289_v60 = vld [vmem:[#allocation5 + $0x20] sm:$0xff]  ;;  %v291_v63 = vld [vmem:[#allocation5 + $0x30] sm:$0xff]  ;;  %v292_v0 = vld [vmem:[#allocation5 + $0x38] sm:$0xff] }
  0x31   :  { %521 = vmatpush3.bf16.msra.mxu1 %v520_v14  ;;  %v547_v62 = vpack.c.bf16 %v290_v61, %v289_v60  ;;  %v550_v1 = vpack.c.bf16 %v292_v0, %v291_v63  ;;  %v293_v2 = vld [vmem:[#allocation5 + $0x40] sm:$0xff]  ;;  %v298_v10 = vld [vmem:[#allocation5 + $0x68] sm:$0xff]  ;;  %v299_v12 = vld [vmem:[#allocation5 + $0x70] sm:$0xff] }
  0x32   :  { %522 = vmatprep.subr.bf16.mxu1 %v656_v3  ;;  %542 = vmatpush3.bf16.msra.mxu0 %v541_v56  ;;  %v297_v9 = vld [vmem:[#allocation5 + $0x60] sm:$0xff]  ;;  %v300_v13 = vld [vmem:[#allocation5 + $0x78] sm:$0xff] }
  0x33   :  { %543 = vmatprep.subr.bf16.mxu0 %v656_v3  ;;  %v559_v11 = vpack.c.bf16 %v298_v10, %v297_v9  ;;  %v562_v14 = vpack.c.bf16 %v300_v13, %v299_v12  ;;  %v402_v25 = vld [vmem:[%s781_s4 + $0x1] ss:$0 sm:$0xff]  ;;  %v404_v30 = vld [vmem:[%s783_s6] ss:$0 sm:$0xff] }
  0x35   :  { %524 = vmatpush3.bf16.msra.mxu1 %v523_v17 }
  0x36   :  { %525 = vmatprep.subr.bf16.mxu1 %v656_v3  ;;  %545 = vmatpush3.bf16.msra.mxu0 %v544_v59 }
  0x37   :  { %546 = vmatprep.subr.bf16.mxu0 %v656_v3 }
  0x39   :  { %527 = vmatpush3.bf16.msra.mxu1 %v526_v20 }
  0x3a   :  { %528 = vmatprep.subr.bf16.mxu1 %v656_v3  ;;  %548 = vmatpush3.bf16.msra.mxu0 %v547_v62 }
  0x3b   :  { %549 = vmatprep.subr.bf16.mxu0 %v656_v3 }
  0x3d   :  { %530 = vmatpush3.bf16.msra.mxu1 %v529_v23 }
  0x3e   :  { %531 = vmatprep.subr.bf16.mxu1 %v656_v3  ;;  %551 = vmatpush3.bf16.msra.mxu0 %v550_v1 }
  0x3f   :  { %552 = vmatprep.subr.bf16.mxu0 %v656_v3 }
  0x41   :  { %533 = vmatpush3.bf16.msra.mxu1 %v532_v26 }
  0x42   :  { %534 = vmatprep.subr.bf16.mxu1 %v656_v3 }
  0x45   :  { %536 = vmatpush3.bf16.msra.mxu1 %v535_v29 }
  0x46   :  { %537 = vmatprep.subr.bf16.mxu1 %v656_v3 }
  0x49   :  { %539 = vmatpush3.bf16.msra.mxu1 %v538_v32 }
  0xfc   :  { %v136_v5 = vpop.f32.mrb[0].mxu0 }
  0xfd   :  { %v137_v6 = vadd.f32 %v396_v4, %v136_v5  ;;  %v445_v7 = vpop.f32.mrb[1].mxu0  ;;  %v294_v4 = vld [vmem:[#allocation5 + $0x48] sm:$0xff] }
  0xfe   :  { %v553_v5 = vpack.c.bf16 %v294_v4, %v293_v2  ;;  %v296_v7 = vld [vmem:[#allocation5 + $0x58] sm:$0xff] }
  0xff   :  { %142 = vadd.xlane.f32.xlu0 %v137_v6  ;;  %v145_v8 = vmul.f32 %v137_v6, %v137_v6 }
 0x100   :  { %554 = vmatpush3.bf16.msra.mxu0 %v553_v5 }
 0x101   :  { %555 = vmatprep.subr.bf16.mxu0 %v656_v3 }
 0x103   :  { %146 = vadd.xlane.f32.xlu0 %v145_v8 }
 0x18c   :  { %v143_v33 = vpop.xlane.xlu0 %142 }
 0x18d   :  { %v144_v34 = vmul.f32 0.015625, %v143_v33 }
 0x18f   :  { %v149_v36 = vmul.f32 %v144_v34, %v144_v34  ;;  %v152_v41 = vsub.f32 %v137_v6, %v144_v34  ;;  %v295_v6 = vld [vmem:[#allocation5 + $0x50] sm:$0xff] }
 0x190   :  { %v147_v35 = vpop.xlane.xlu0 %146  ;;  %v556_v8 = vpack.c.bf16 %v296_v7, %v295_v6 }
 0x191   :  { %v148_v37 = vmul.f32 0.015625, %v147_v35 }
 0x192   :  { %557 = vmatpush3.bf16.msra.mxu0 %v556_v8 }
 0x193   :  { %v150_v38 = vsub.f32 %v148_v37, %v149_v36  ;;  %558 = vmatprep.subr.bf16.mxu0 %v656_v3 }
 0x195   :  { %v151_v39 = vmax.f32 %v150_v38, 0.0 }
 0x196   :  { %560 = vmatpush3.bf16.msra.mxu0 %v559_v11 }
 0x197   :  { %v153_v40 = vadd.f32 1e-05, %v151_v39  ;;  %561 = vmatprep.subr.bf16.mxu0 %v656_v3  ;;  %v403_v3 = vld [vmem:[%s781_s4 + $0x2] ss:$0 sm:$0xff] }
 0x199   :  { %572 = vrsqrt.f32 %v153_v40 }
 0x19a   :  { %563 = vmatpush3.bf16.msra.mxu0 %v562_v14 }
 0x1a3   :  { %v573_v42 = vpop.eup %572 }
 0x1a4   :  { %v155_v44 = vmul.f32 %v573_v42, %v152_v41 }
 0x1a6   :  { %v160_v46 = vmul.f32 %v399_v43, %v155_v44 }
 0x1a8   :  { %v165_v47 = vadd.f32 %v400_v45, %v160_v46 }
 0x1aa   :  { %v166_v48 = vmax.f32 %v165_v47, 0.0 }
 0x1ac   :  { %479 = vmatmul.mubr.f32.vlgmr.msra.gmra.mrb[0].mxu1 %v166_v48 }
 0x27f   :  { %v254_v50 = vpop.f32.mrb[0].mxu1 }
 0x280   :  { %v255_v51 = vadd.f32 %v401_v49, %v254_v50  ;;  %v480_v52 = vpop.f32.mrb[1].mxu1 }
 0x282   :  { %260 = vadd.xlane.f32.xlu1 %v255_v51  ;;  %v263_v53 = vmul.f32 %v255_v51, %v255_v51 }
 0x286   :  { %264 = vadd.xlane.f32.xlu1 %v263_v53 }
 0x30f   :  { %v261_v15 = vpop.xlane.xlu1 %260 }
 0x310   :  { %v262_v16 = vmul.f32 0.03125, %v261_v15 }
 0x312   :  { %v267_v18 = vmul.f32 %v262_v16, %v262_v16  ;;  %v270_v23 = vsub.f32 %v255_v51, %v262_v16 }
 0x313   :  { %v265_v17 = vpop.xlane.xlu1 %264 }
 0x314   :  { %v266_v19 = vmul.f32 0.03125, %v265_v17 }
 0x316   :  { %v268_v20 = vsub.f32 %v266_v19, %v267_v18 }
 0x318   :  { %v269_v21 = vmax.f32 %v268_v20, 0.0 }
 0x31a   :  { %v271_v22 = vadd.f32 1e-05, %v269_v21 }
 0x31c   :  { %574 = vrsqrt.f32 %v271_v22 }
 0x326   :  { %v575_v24 = vpop.eup %574 }
 0x327   :  { %v273_v26 = vmul.f32 %v575_v24, %v270_v23 }
 0x329   :  { %v278_v27 = vmul.f32 %v402_v25, %v273_v26 }
 0x32b   :  { %v283_v28 = vadd.f32 %v403_v3, %v278_v27 }
 0x32d   :  { %v284_v29 = vmax.f32 %v283_v28, 0.0 }
 0x32f   :  { %514 = vmatmul.mubr.f32.vlgmr.msra.gmra.mrb[2].mxu0 %v284_v29 }
 0x402   :  { %v374_v31 = vpop.f32.mrb[2].mxu0 }
 0x403   :  { %v375_v32 = vadd.f32 %v404_v30, %v374_v31  ;;  %v515_v33 = vpop.f32.mrb[3].mxu0 }
 0x405   :  { %576 = vtanh.f32 %v375_v32 }
 0x40f   :  { %v577_v34 = vpop.eup %576 }
 0x410   :  { %379 = vst [vmem:[#allocation7] sm:$0xff] %v577_v34 }
 0x411   :  { %633 = shalt.err (!%p630_p6)
}
 0x412   :  { %s634_s6 = scalar_lea.hbm %s784_s7, 128 }
 0x413   :  { %p635_p7 = scmp.ne.s32.totalorder %s784_s7, %s634_s6  ;;  %p638_p8 = scmp.lt.u32.totalorder %s634_s6, %s784_s7 }
 0x415   :  { %p640_p9 = pnand %p638_p8, %p635_p7 }
 0x417   :  { %643 = shalt.err (!%p640_p9)
}
 0x418   :  { %389 = dma.vmem_to_hbm [thread:$0]  %s387_s18, 128, %s784_s7, [#allocation4]  }
 0x419   :  { %648 = dma.done.wait [#allocation4], 128  }
 0x41a   :  { %649 = vsyncadd [#allocation4], 4294967168 }
 0x41b   :  { %393 = vsyncpa [#allocation3], 1 }
 0x41c   :  { %394 = vsyncpa [#allocation6], 1 }
 0x41d   :  { %395 = vsyncpa [#allocation4], 1 }

</bundles_post_ra>
